<compile_context>
chip_gen: v7x
topology: tpu7x:2x2x1
jax: 0.10.0
libtpu: 0.0.40
codegen_flags: <defaults>
</compile_context>

<pallas_src>
import math
from functools import partial

import jax
import jax.numpy as jnp
from jax.experimental import pallas as pl
from jax.experimental.pallas import tpu as pltpu


def _round_up(a, b):
    return ((a + b - 1) // b) * b


_INV_SQRT2 = 1.0 / math.sqrt(2.0)


def _gelu_f32(h, approx):
    if approx:
        # tanh approximation: transcendental goes to the otherwise-idle EUP slot.
        return jax.nn.gelu(h, approximate=True)
    # Exact (erf-based) GELU, matching torch.nn.functional.gelu default.
    return 0.5 * h * (1.0 + jax.lax.erf(h * _INV_SQRT2))


def _vmem_capacity_bytes():
    """Per-core VMEM capacity; conservative 64 MiB (v7x per-TC) if query fails."""
    try:
        cap = int(pltpu.get_tpu_info().vmem_capacity_bytes)
        if cap > 0:
            return cap
    except Exception:
        pass
    return 64 * 1024 * 1024


# ----------------------------------------------------------------------------- kernels
def _mlp_kernel_resident(approx_gelu, x_ref, w1_ref, b1_ref, w2_ref, b2_ref, o_ref):
    # x_ref: (tm, H)  w1_ref: (H, M)  b1_ref: (1, M)  w2_ref: (M, H)  b2_ref: (1, H)
    h = jnp.dot(x_ref[...], w1_ref[...], preferred_element_type=jnp.float32)
    h = _gelu_f32(h + b1_ref[...].astype(jnp.float32), approx_gelu)
    # TODO(synk): dropout omitted (identity at inference; no RNG mask applied)
    h = h.astype(w2_ref.dtype)  # keep fc2 on the fast (bf16-capable) MXU path
    y = jnp.dot(h, w2_ref[...], preferred_element_type=jnp.float32)
    o_ref[...] = (y + b2_ref[...].astype(jnp.float32)).astype(o_ref.dtype)


def _mlp_kernel_tiled(approx_gelu, x_ref, w1_ref, b1_ref, w2_ref, b2_ref, o_ref, acc_ref):
    # Streams k-slices of W1/W2 over the mlp dim; accumulates partial fc2 in f32 VMEM.
    k = pl.program_id(1)
    nk = pl.num_programs(1)

    h = jnp.dot(x_ref[...], w1_ref[...], preferred_element_type=jnp.float32)
    h = _gelu_f32(h + b1_ref[...].astype(jnp.float32), approx_gelu)
    # TODO(synk): dropout omitted (identity at inference; no RNG mask applied)
    h = h.astype(w2_ref.dtype)
    part = jnp.dot(h, w2_ref[...], preferred_element_type=jnp.float32)

    @pl.when(k == 0)
    def _():
        acc_ref[...] = part           # direct store: no separate zero-init pass

    @pl.when(k > 0)
    def _():
        acc_ref[...] += part

    @pl.when(k == nk - 1)
    def _():
        o_ref[...] = (acc_ref[...] + b2_ref[...].astype(jnp.float32)).astype(o_ref.dtype)


# ----------------------------------------------------------------------------- wrapper
def mlp_forward(x, w1, b1, w2, b2, *, tile_m=None, tile_k=None, approx_gelu=False):
    """x: (B, S, H) -> (B, S, H). Fused fc1 + GELU + fc2 Pallas kernel.

    Weights are stored as (in_features, out_features) == torch Linear.weight.T.
    """
    B, S, H = x.shape
    assert w1.shape[0] == H and w2.shape[1] == H
    M = w1.shape[1]
    assert w2.shape[0] == M and b1.shape == (1, M) and b2.shape == (1, H)

    rows = B * S
    x2d = x.reshape(rows, H)

    sublane = 16 if x.dtype == jnp.bfloat16 else 8
    rows_p0 = _round_up(rows, sublane)
    auto_tm = tile_m is None

    xb = jnp.dtype(x.dtype).itemsize
    w1b = jnp.dtype(w1.dtype).itemsize
    w2b = jnp.dtype(w2.dtype).itemsize
    b1b = jnp.dtype(b1.dtype).itemsize
    b2b = jnp.dtype(b2.dtype).itemsize

    vmem_cap = _vmem_capacity_bytes()
    budget = int(0.80 * vmem_cap)       # ~20% headroom for compiler-internal scratch

    # Conservative (double-buffered) weight footprint — Buffered(1) only adds slack.
    weight_bytes_db = 2 * (H * M * w1b + M * H * w2b + M * b1b + H * b2b)

    def _resident_footprint(tm):
        acts = 2 * 2 * tm * H * xb               # double-buffered x-in + out tiles
        inter = tm * M * (4 + w2b)               # f32 fc1/GELU intermediate + cast copy
        return weight_bytes_db + acts + inter

    def _tiled_footprint(tm, tk):
        streamed = 2 * (tm * H * xb + H * tk * w1b + tk * b1b
                        + tk * H * w2b + H * b2b + tm * H * xb)
        return streamed + tm * H * 4 + tm * tk * (4 + w2b)

    # ---- tile selection -----------------------------------------------------
    if tile_m is not None:
        tile_m = max(sublane, min(_round_up(tile_m, sublane), rows_p0))

    if tile_k is None:
        # Prefer the weights-resident mode: W1/W2 are DMA'd from HBM exactly once.
        chosen = None
        tm_cands = (tile_m,) if tile_m is not None else (1024, 512, 256, 128, 64, 32, sublane)
        for cand in tm_cands:
            tm_c = max(sublane, min(_round_up(cand, sublane), rows_p0))
            if _resident_footprint(tm_c) <= budget:
                chosen = tm_c
                break
        if chosen is not None:
            tile_m, tile_k = chosen, M
        else:
            # Streamed-weights fallback: large row tile (arithmetic intensity),
            # modest 128-multiple k tile (VMEM on v7x).
            if tile_m is None:
                tile_m = min(_round_up(1024, sublane), rows_p0)
            if M % 128 == 0:
                tile_k = min(512, M)
                while M % tile_k:
                    tile_k -= 128
            else:
                tile_k = M
            while tile_m > 2 * sublane and _tiled_footprint(tile_m, tile_k) > budget:
                tile_m = max(sublane, _round_up(tile_m // 2, sublane))
    else:
        tile_k = min(tile_k, M)
        if tile_m is None:
            tile_m = min(_round_up(1024 if tile_k < M else 512, sublane), rows_p0)
            tile_m = max(sublane, tile_m)

    resident = tile_k >= M
    if resident:
        tile_k = M
    else:
        assert M % tile_k == 0, "tile_k must divide mlp_dim"

    # v7x megacore: ensure the 'parallel' row axis has >= 2 steps when there is
    # enough work to amortize the ~0.35us/step overhead (>= ~256 rows per tile).
    if auto_tm and rows_p0 // tile_m <= 1 and rows_p0 >= 512:
        tile_m = max(sublane, _round_up(pl.cdiv(rows_p0, 2), sublane))

    # Pad rows to an exact multiple of tile_m: no partial trailing block.
    rows_p = _round_up(rows, tile_m)
    if rows_p != rows:
        x2d = jnp.pad(x2d, ((0, rows_p - rows), (0, 0)))
    grid_m = rows_p // tile_m
    grid_k = 1 if resident else M // tile_k

    fp = _resident_footprint(tile_m) if resident else _tiled_footprint(tile_m, tile_k)
    vmem_limit = max(32 * 1024 * 1024, min(int(1.3 * fp), int(0.9 * vmem_cap)))

    kernel = partial(_mlp_kernel_resident if resident else _mlp_kernel_tiled, approx_gelu)

    def _call(use_buffered):
        def spec(shape, index_map, constant):
            if use_buffered and constant and hasattr(pl, "Buffered"):
                # Constant-index blocks need no double buffering.
                return pl.BlockSpec(shape, index_map, pipeline_mode=pl.Buffered(1))
            return pl.BlockSpec(shape, index_map)

        if resident:
            grid = (grid_m,)
            in_specs = [
                spec((tile_m, H), lambda i: (i, 0), False),   # x rows tile
                spec((H, M), lambda i: (0, 0), True),         # W1 (resident)
                spec((1, M), lambda i: (0, 0), True),         # b1 (resident)
                spec((M, H), lambda i: (0, 0), True),         # W2 (resident)
                spec((1, H), lambda i: (0, 0), True),         # b2 (resident)
            ]
            out_specs = pl.BlockSpec((tile_m, H), lambda i: (i, 0))
            scratch = ()
            dims = ("parallel",)
        else:
            grid = (grid_m, grid_k)
            in_specs = [
                spec((tile_m, H), lambda i, k: (i, 0), False),   # x rows tile
                spec((H, tile_k), lambda i, k: (0, k), False),   # W1 k-slice
                spec((1, tile_k), lambda i, k: (0, k), False),   # b1 k-slice
                spec((tile_k, H), lambda i, k: (k, 0), False),   # W2 k-slice
                spec((1, H), lambda i, k: (0, 0), True),         # b2 (constant)
            ]
            out_specs = pl.BlockSpec((tile_m, H), lambda i, k: (i, 0))
            scratch = (pltpu.VMEM((tile_m, H), jnp.float32),)
            dims = ("parallel", "arbitrary")

        return pl.pallas_call(
            kernel,
            out_shape=jax.ShapeDtypeStruct((rows_p, H), x.dtype),
            grid_spec=pltpu.PrefetchScalarGridSpec(
                num_scalar_prefetch=0,
                grid=grid,
                in_specs=in_specs,
                out_specs=out_specs,
                scratch_shapes=scratch,
            ),
            compiler_params=pltpu.CompilerParams(
                dimension_semantics=dims,
                vmem_limit_bytes=int(vmem_limit),
            ),
        )(x2d, w1, b1, w2, b2)

    try:
        out2d = _call(True)
    except Exception:
        # Installed Pallas rejects pipeline_mode=Buffered(1): retry without it.
        out2d = _call(False)

    return out2d[:rows].reshape(B, S, H)


# ----------------------------------------------------------------------------- helpers
def xavier_uniform(key, fan_in, fan_out, dtype=jnp.float32):
    limit = math.sqrt(6.0 / (fan_in + fan_out))
    return jax.random.uniform(key, (fan_in, fan_out), dtype=dtype,
                              minval=-limit, maxval=limit)


def reference_mlp(x, w1, b1, w2, b2):
    h = jnp.dot(x.astype(jnp.float32), w1.astype(jnp.float32)) + b1[0]
    h = 0.5 * h * (1.0 + jax.lax.erf(h / math.sqrt(2.0)))
    return (jnp.dot(h, w2.astype(jnp.float32)) + b2[0]).astype(x.dtype)


if __name__ == "__main__":
    # config: hidden_size=32, mlp_dim=64, batch=2, seq=8
    B, S, H, M = 2, 8, 32, 64

    key = jax.random.PRNGKey(0)
    kx, kw1, kb1, kw2, kb2 = jax.random.split(key, 5)

    x = jax.random.normal(kx, (B, S, H), dtype=jnp.float32)

    # deterministic init mirroring _init_weights (xavier_uniform weights, normal(std=1e-6) biases)
    w1 = xavier_uniform(kw1, H, M)                               # (H, M) == fc1.weight.T
    b1 = (jax.random.normal(kb1, (1, M)) * 1e-6).astype(jnp.float32)
    w2 = xavier_uniform(kw2, M, H)                               # (M, H) == fc2.weight.T
    b2 = (jax.random.normal(kb2, (1, H)) * 1e-6).astype(jnp.float32)

    out = mlp_forward(x, w1, b1, w2, b2)
    out = jax.block_until_ready(out)

    ref = reference_mlp(x, w1, b1, w2, b2)
    assert out.shape == (B, S, H)
    assert jnp.allclose(out, ref, atol=1e-5, rtol=1e-5), "mismatch vs reference"

    print("KERNEL_OK")
</pallas_src>

<mosaic_0001>
module attributes {stable_mosaic.version = 11 : i64} {
  func.func @_mlp_kernel_resident(%arg0: i32, %arg1: memref<16x32xf32, #tpu.memory_space<vmem>>, %arg2: memref<32x64xf32, #tpu.memory_space<vmem>>, %arg3: memref<1x64xf32, #tpu.memory_space<vmem>>, %arg4: memref<64x32xf32, #tpu.memory_space<vmem>>, %arg5: memref<1x32xf32, #tpu.memory_space<vmem>>, %arg6: memref<16x32xf32, #tpu.memory_space<vmem>>) attributes {dimension_semantics = [#tpu.dimension_semantics<parallel>], iteration_bounds = array<i64: 1>, scalar_prefetch = 0 : i64, scratch_operands = 0 : i64, tpu.core_type = #tpu.core_type<tc>, window_params = [{transform_indices = @transform_0, window_bounds = array<i64: 16, 32>}, {pipeline_mode = #tpu.pipeline_mode<synchronous>, transform_indices = @transform_1, window_bounds = array<i64: 32, 64>}, {pipeline_mode = #tpu.pipeline_mode<synchronous>, transform_indices = @transform_2, window_bounds = array<i64: 1, 64>}, {pipeline_mode = #tpu.pipeline_mode<synchronous>, transform_indices = @transform_3, window_bounds = array<i64: 64, 32>}, {pipeline_mode = #tpu.pipeline_mode<synchronous>, transform_indices = @transform_4, window_bounds = array<i64: 1, 32>}, {transform_indices = @transform_5, window_bounds = array<i64: 16, 32>}]} {
    %c0 = arith.constant 0 : index
    %c0_0 = arith.constant 0 : index
    %0 = vector.load %arg1[%c0, %c0_0] : memref<16x32xf32, #tpu.memory_space<vmem>>, vector<16x32xf32>
    %c0_1 = arith.constant 0 : index
    %c0_2 = arith.constant 0 : index
    %1 = vector.load %arg2[%c0_1, %c0_2] : memref<32x64xf32, #tpu.memory_space<vmem>>, vector<32x64xf32>
    %cst = arith.constant dense<0.000000e+00> : vector<16x64xf32>
    %2 = tpu.matmul %0, %1, %cst {dimension_numbers = #tpu.dot_dimension_numbers<[1], [0], [0], [1], [0, 0, 1, 1], [], []>} : vector<16x32xf32>, vector<32x64xf32>, vector<16x64xf32> -> vector<16x64xf32>
    %c0_3 = arith.constant 0 : index
    %c0_4 = arith.constant 0 : index
    %3 = vector.load %arg3[%c0_3, %c0_4] : memref<1x64xf32, #tpu.memory_space<vmem>>, vector<1x64xf32>
    %4 = vector.broadcast %3 : vector<1x64xf32> to vector<16x64xf32>
    %5 = arith.addf %2, %4 : vector<16x64xf32>
    %cst_5 = arith.constant 5.000000e-01 : f32
    %6 = vector.broadcast %cst_5 : f32 to vector<16x64xf32>
    %7 = arith.mulf %6, %5 : vector<16x64xf32>
    %cst_6 = arith.constant 0.707106769 : f32
    %8 = vector.broadcast %cst_6 : f32 to vector<16x64xf32>
    %9 = arith.mulf %5, %8 : vector<16x64xf32>
    %10 = math.erf %9 : vector<16x64xf32>
    %cst_7 = arith.constant 1.000000e+00 : f32
    %11 = vector.broadcast %cst_7 : f32 to vector<16x64xf32>
    %12 = arith.addf %11, %10 : vector<16x64xf32>
    %13 = arith.mulf %7, %12 : vector<16x64xf32>
    %c0_8 = arith.constant 0 : index
    %c0_9 = arith.constant 0 : index
    %14 = vector.load %arg4[%c0_8, %c0_9] : memref<64x32xf32, #tpu.memory_space<vmem>>, vector<64x32xf32>
    %cst_10 = arith.constant dense<0.000000e+00> : vector<16x32xf32>
    %15 = tpu.matmul %13, %14, %cst_10 {dimension_numbers = #tpu.dot_dimension_numbers<[1], [0], [0], [1], [0, 0, 1, 1], [], []>} : vector<16x64xf32>, vector<64x32xf32>, vector<16x32xf32> -> vector<16x32xf32>
    %c0_11 = arith.constant 0 : index
    %c0_12 = arith.constant 0 : index
    %16 = vector.load %arg5[%c0_11, %c0_12] : memref<1x32xf32, #tpu.memory_space<vmem>>, vector<1x32xf32>
    %17 = vector.broadcast %16 : vector<1x32xf32> to vector<16x32xf32>
    %18 = arith.addf %15, %17 : vector<16x32xf32>
    %c0_13 = arith.constant 0 : index
    %c0_14 = arith.constant 0 : index
    %19 = vector.load %arg6[%c0_13, %c0_14] : memref<16x32xf32, #tpu.memory_space<vmem>>, vector<16x32xf32>
    tpu.vector_store %arg6[%c0_13, %c0_14], %18 {strides = array<i32>} : memref<16x32xf32, #tpu.memory_space<vmem>>, vector<16x32xf32>,
    return
  }
  func.func @transform_0(%arg0: i32) -> (i32, i32) {
    %c0_i32 = arith.constant 0 : i32
    %c0_i32_0 = arith.constant 0 : i32
    return %arg0, %c0_i32 : i32, i32
  }
  func.func @transform_1(%arg0: i32) -> (i32, i32) {
    %c0_i32 = arith.constant 0 : i32
    %c0_i32_0 = arith.constant 0 : i32
    %c0_i32_1 = arith.constant 0 : i32
    return %c0_i32, %c0_i32_0 : i32, i32
  }
  func.func @transform_2(%arg0: i32) -> (i32, i32) {
    %c0_i32 = arith.constant 0 : i32
    %c0_i32_0 = arith.constant 0 : i32
    %c0_i32_1 = arith.constant 0 : i32
    return %c0_i32, %c0_i32_0 : i32, i32
  }
  func.func @transform_3(%arg0: i32) -> (i32, i32) {
    %c0_i32 = arith.constant 0 : i32
    %c0_i32_0 = arith.constant 0 : i32
    %c0_i32_1 = arith.constant 0 : i32
    return %c0_i32, %c0_i32_0 : i32, i32
  }
  func.func @transform_4(%arg0: i32) -> (i32, i32) {
    %c0_i32 = arith.constant 0 : i32
    %c0_i32_0 = arith.constant 0 : i32
    %c0_i32_1 = arith.constant 0 : i32
    return %c0_i32, %c0_i32_0 : i32, i32
  }
  func.func @transform_5(%arg0: i32) -> (i32, i32) {
    %c0_i32 = arith.constant 0 : i32
    %c0_i32_0 = arith.constant 0 : i32
    return %arg0, %c0_i32 : i32, i32
  }
}

module attributes {stable_mosaic.version = 11 : i64} {
  func.func @_mlp_kernel_resident(%arg0: i32, %arg1: memref<16x32xf32, #tpu.memory_space<vmem>>, %arg2: memref<32x64xf32, #tpu.memory_space<vmem>>, %arg3: memref<1x64xf32, #tpu.memory_space<vmem>>, %arg4: memref<64x32xf32, #tpu.memory_space<vmem>>, %arg5: memref<1x32xf32, #tpu.memory_space<vmem>>, %arg6: memref<16x32xf32, #tpu.memory_space<vmem>>) attributes {dimension_semantics = [#tpu.dimension_semantics<parallel>], iteration_bounds = array<i64: 1>, scalar_prefetch = 0 : i64, scratch_operands = 0 : i64, tpu.core_type = #tpu.core_type<tc>, window_params = [{transform_indices = @transform_0, window_bounds = array<i64: 16, 32>}, {pipeline_mode = #tpu.pipeline_mode<synchronous>, transform_indices = @transform_1, window_bounds = array<i64: 32, 64>}, {pipeline_mode = #tpu.pipeline_mode<synchronous>, transform_indices = @transform_2, window_bounds = array<i64: 1, 64>}, {pipeline_mode = #tpu.pipeline_mode<synchronous>, transform_indices = @transform_3, window_bounds = array<i64: 64, 32>}, {pipeline_mode = #tpu.pipeline_mode<synchronous>, transform_indices = @transform_4, window_bounds = array<i64: 1, 32>}, {transform_indices = @transform_5, window_bounds = array<i64: 16, 32>}]} {
    %c0 = arith.constant 0 : index
    %c0_0 = arith.constant 0 : index
    %0 = vector.load %arg1[%c0, %c0_0] : memref<16x32xf32, #tpu.memory_space<vmem>>, vector<16x32xf32>
    %c0_1 = arith.constant 0 : index
    %c0_2 = arith.constant 0 : index
    %1 = vector.load %arg2[%c0_1, %c0_2] : memref<32x64xf32, #tpu.memory_space<vmem>>, vector<32x64xf32>
    %cst = arith.constant dense<0.000000e+00> : vector<16x64xf32>
    %2 = tpu.matmul %0, %1, %cst {dimension_numbers = #tpu.dot_dimension_numbers<[1], [0], [0], [1], [0, 0, 1, 1], [], []>} : vector<16x32xf32>, vector<32x64xf32>, vector<16x64xf32> -> vector<16x64xf32>
    %c0_3 = arith.constant 0 : index
    %c0_4 = arith.constant 0 : index
    %3 = vector.load %arg3[%c0_3, %c0_4] : memref<1x64xf32, #tpu.memory_space<vmem>>, vector<1x64xf32>
    %4 = vector.broadcast %3 : vector<1x64xf32> to vector<16x64xf32>
    %5 = arith.addf %2, %4 : vector<16x64xf32>
    %cst_5 = arith.constant 5.000000e-01 : f32
    %6 = vector.broadcast %cst_5 : f32 to vector<16x64xf32>
    %7 = arith.mulf %6, %5 : vector<16x64xf32>
    %cst_6 = arith.constant 0.707106769 : f32
    %8 = vector.broadcast %cst_6 : f32 to vector<16x64xf32>
    %9 = arith.mulf %5, %8 : vector<16x64xf32>
    %10 = math.erf %9 : vector<16x64xf32>
    %cst_7 = arith.constant 1.000000e+00 : f32
    %11 = vector.broadcast %cst_7 : f32 to vector<16x64xf32>
    %12 = arith.addf %11, %10 : vector<16x64xf32>
    %13 = arith.mulf %7, %12 : vector<16x64xf32>
    %c0_8 = arith.constant 0 : index
    %c0_9 = arith.constant 0 : index
    %14 = vector.load %arg4[%c0_8, %c0_9] : memref<64x32xf32, #tpu.memory_space<vmem>>, vector<64x32xf32>
    %cst_10 = arith.constant dense<0.000000e+00> : vector<16x32xf32>
    %15 = tpu.matmul %13, %14, %cst_10 {dimension_numbers = #tpu.dot_dimension_numbers<[1], [0], [0], [1], [0, 0, 1, 1], [], []>} : vector<16x64xf32>, vector<64x32xf32>, vector<16x32xf32> -> vector<16x32xf32>
    %c0_11 = arith.constant 0 : index
    %c0_12 = arith.constant 0 : index
    %16 = vector.load %arg5[%c0_11, %c0_12] : memref<1x32xf32, #tpu.memory_space<vmem>>, vector<1x32xf32>
    %17 = vector.broadcast %16 : vector<1x32xf32> to vector<16x32xf32>
    %18 = arith.addf %15, %17 : vector<16x32xf32>
    %c0_13 = arith.constant 0 : index
    %c0_14 = arith.constant 0 : index
    %19 = vector.load %arg6[%c0_13, %c0_14] : memref<16x32xf32, #tpu.memory_space<vmem>>, vector<16x32xf32>
    tpu.vector_store %arg6[%c0_13, %c0_14], %18 {strides = array<i32>} : memref<16x32xf32, #tpu.memory_space<vmem>>, vector<16x32xf32>,
    return
  }
  func.func @transform_0(%arg0: i32) -> (i32, i32) {
    %c0_i32 = arith.constant 0 : i32
    %c0_i32_0 = arith.constant 0 : i32
    return %arg0, %c0_i32 : i32, i32
  }
  func.func @transform_1(%arg0: i32) -> (i32, i32) {
    %c0_i32 = arith.constant 0 : i32
    %c0_i32_0 = arith.constant 0 : i32
    %c0_i32_1 = arith.constant 0 : i32
    return %c0_i32, %c0_i32_0 : i32, i32
  }
  func.func @transform_2(%arg0: i32) -> (i32, i32) {
    %c0_i32 = arith.constant 0 : i32
    %c0_i32_0 = arith.constant 0 : i32
    %c0_i32_1 = arith.constant 0 : i32
    return %c0_i32, %c0_i32_0 : i32, i32
  }
  func.func @transform_3(%arg0: i32) -> (i32, i32) {
    %c0_i32 = arith.constant 0 : i32
    %c0_i32_0 = arith.constant 0 : i32
    %c0_i32_1 = arith.constant 0 : i32
    return %c0_i32, %c0_i32_0 : i32, i32
  }
  func.func @transform_4(%arg0: i32) -> (i32, i32) {
    %c0_i32 = arith.constant 0 : i32
    %c0_i32_0 = arith.constant 0 : i32
    %c0_i32_1 = arith.constant 0 : i32
    return %c0_i32, %c0_i32_0 : i32, i32
  }
  func.func @transform_5(%arg0: i32) -> (i32, i32) {
    %c0_i32 = arith.constant 0 : i32
    %c0_i32_0 = arith.constant 0 : i32
    return %arg0, %c0_i32 : i32, i32
  }
}

</mosaic_0001>

<bundles_post_ra>
// kernel: tpu_custom_call.1
= control target key start
LH: loop header
LB: loop body
LE: loop exit
PB: predicated region body
PF: predicated region fallthrough
CT: control target
= control target key end

     0   :  { %vm34_vm0 = vcmask 261120   ;;  %s445_s0 = inlined_call_operand.vmem [shape: f32[16,32], index: 0, kind: input, shape index: {}]   ;;  %s446_s1 = inlined_call_operand.vmem [shape: f32[32,64], index: 1, kind: input, shape index: {}]   ;;  %s447_s2 = inlined_call_operand.vmem [shape: f32[1,64], index: 2, kind: input, shape index: {}]   ;;  %s448_s3 = inlined_call_operand.vmem [shape: f32[64,32], index: 3, kind: input, shape index: {}]   ;;  %s449_s4 = inlined_call_operand.vmem [shape: f32[1,32], index: 4, kind: input, shape index: {}]   ;;  %s450_s5 = inlined_call_operand.hbm [shape: f32[16,32], index: 5, kind: output, shape index: {}]  }
   0x1   :  { %v23_v0 = vld [vmem:[%s446_s1] sm:$0xff]  ;;  %v24_v1 = vld [vmem:[%s446_s1 + $0x8] sm:$0xff]  ;;  %v25_v2 = vld [vmem:[%s446_s1 + $0x10] sm:$0xff] }
   0x2   :  { %v293_v3 = vpack.c.bf16 %v24_v1, %v23_v0  ;;  %v26_v4 = vld [vmem:[%s446_s1 + $0x18] sm:$0xff]  ;;  %v21_v5 = vld [vmem:[%s445_s0] sm:$0xff] }
   0x3   :  { %v297_v6 = vpack.c.bf16 %v26_v4, %v25_v2  ;;  %271 = vmatprep.mubr.msk.f32.mxu0 %vm34_vm0, %v21_v5 }
   0x4   :  { %10 = vsyncpa [#allocation3], 0  ;;  %294 = vmatprep.subr.bf16.mxu0 %v293_v3  ;;  %v22_v7 = vld [vmem:[%s445_s0 + $0x8] sm:$0xff]  ;;  %v126_v8 = vld [vmem:[%s448_s3] sm:$0xff]  ;;  %vm141_vm1 = vcmask 523264   ;;  %s348_s21 = smov [#allocation2]  }
   0x5   :  { %296 = vmatpush3.bf16.msra.mxu0 %v293_v3  ;;  %v127_v9 = vld [vmem:[%s448_s3 + $0x8] sm:$0xff]  ;;  %v128_v11 = vld [vmem:[%s448_s3 + $0x10] sm:$0xff]  ;;  %v129_v12 = vld [vmem:[%s448_s3 + $0x18] sm:$0xff]  ;;  %s230_s22 = sshll.u32 %s348_s21, 4  ;;  %s231_s22 = int_to_ptr.vmem [resolvable:$true] %s230_s22 }
   0x6   :  { %298 = vmatprep.subr.bf16.mxu0 %v297_v6  ;;  %v301_v10 = vpack.c.bf16 %v127_v9, %v126_v8  ;;  %v305_v13 = vpack.c.bf16 %v129_v12, %v128_v11  ;;  %v130_v14 = vld [vmem:[%s448_s3 + $0x20] sm:$0xff]  ;;  %v131_v15 = vld [vmem:[%s448_s3 + $0x28] sm:$0xff]  ;;  %v132_v17 = vld [vmem:[%s448_s3 + $0x30] sm:$0xff]  ;;  %s324_s23 = scalar_lea.vmem %s231_s22, 256  ;;  %p329_p1 = scmp.lt.s32.totalorder %s231_s22, %s231_s22 }
   0x7   :  { %v309_v16 = vpack.c.bf16 %v131_v15, %v130_v14  ;;  %v133_v18 = vld [vmem:[%s448_s3 + $0x38] sm:$0xff]  ;;  %v241_v20 = vld [vmem:[%s447_s2] ss:$0 sm:$0xff]  ;;  %p325_p0 = scmp.ne.s32.totalorder %s231_s22, %s324_s23  ;;  %p330_p2 = scmp.lt.s32.totalorder %s324_s23, %s324_s23 }
   0x8   :  { %302 = vmatprep.subr.bf16.mxu1 %v301_v10  ;;  %v313_v19 = vpack.c.bf16 %v133_v18, %v132_v17  ;;  %v244_v35 = vld [vmem:[%s449_s4] ss:$0 sm:$0xff] }
   0x9   :  { %300 = vmatpush3.bf16.msra.mxu0 %v297_v6  ;;  %304 = vmatpush3.bf16.msra.mxu1 %v301_v10  ;;  %p331_p3 = por %p330_p2, %p329_p1 }
   0xa   :  { %306 = vmatprep.subr.bf16.mxu1 %v305_v13 }
   0xb   :  { %p332_p4 = pnand %p331_p3, %p325_p0 }
   0xc   :  { %272 = vmatmul.mubr.msk.f32.vlgmr.msra.gmra.mrb[0].mxu0 %vm34_vm0, %v22_v7 }
   0xd   :  { %308 = vmatpush3.bf16.msra.mxu1 %v305_v13 }
   0xe   :  { %310 = vmatprep.subr.bf16.mxu1 %v309_v16 }
  0x11   :  { %312 = vmatpush3.bf16.msra.mxu1 %v309_v16 }
  0x12   :  { %314 = vmatprep.subr.bf16.mxu1 %v313_v19 }
  0x15   :  { %316 = vmatpush3.bf16.msra.mxu1 %v313_v19 }
  0xdf   :  { %v273_v21 = vpop.f32.mrb[0].mxu0 }
  0xe0   :  { %v113_v22 = vadd.f32 %v273_v21, %v241_v20  ;;  %v107_v23 = vpop.f32.mrb[1].mxu0 }
  0xe1   :  { %v108_v24 = vadd.f32 %v241_v20, %v107_v23 }
  0xe2   :  { %v119_v25 = vmul.f32 0.70710677, %v113_v22  ;;  %v117_v32 = vmul.f32 0.5, %v113_v22 }
  0xe3   :  { %v118_v26 = vmul.f32 0.70710677, %v108_v24  ;;  %v116_v30 = vmul.f32 0.5, %v108_v24 }
  0xe4   :  { %320 = verf.f32 %v119_v25 }
  0xe5   :  { %322 = verf.f32 %v118_v26 }
  0xee   :  { %v321_v27 = vpop.eup %320 }
  0xef   :  { %v323_v28 = vpop.eup %322  ;;  %v123_v29 = vadd.f32 1.0, %v321_v27 }
  0xf0   :  { %v122_v31 = vadd.f32 1.0, %v323_v28 }
  0xf1   :  { %v125_v34 = vmul.f32 %v123_v29, %v117_v32 }
  0xf2   :  { %v124_v33 = vmul.f32 %v122_v31, %v116_v30 }
  0xf4   :  { %290 = vmatprep.mubr.msk.f32.mxu1 %vm141_vm1, %v124_v33 }
  0xf5   :  { %291 = vmatmul.mubr.msk.f32.vlgmr.msra.gmra.mrb[0].mxu1 %vm141_vm1, %v125_v34 }
 0x1c8   :  { %v292_v36 = vpop.f32.mrb[0].mxu1 }
 0x1c9   :  { %v220_v37 = vadd.f32 %v292_v36, %v244_v35  ;;  %v214_v38 = vpop.f32.mrb[1].mxu1 }
 0x1ca   :  { %v215_v39 = vadd.f32 %v244_v35, %v214_v38 }
 0x1cb   :  { %224 = vst.msk [vmem:[#allocation2 + $0x8] sm:$0xff] %vm34_vm0, %v220_v37 }
 0x1cc   :  { %223 = vst.msk [vmem:[#allocation2] sm:$0xff] %vm34_vm0, %v215_v39 }
 0x1cd   :  { %335 = shalt.err (!%p332_p4)
}
 0x1ce   :  { %s336_s25 = scalar_lea.hbm %s450_s5, 256 }
 0x1cf   :  { %p337_p5 = scmp.ne.s32.totalorder %s450_s5, %s336_s25  ;;  %p340_p6 = scmp.lt.u32.totalorder %s336_s25, %s450_s5 }
 0x1d1   :  { %p342_p7 = pnand %p340_p6, %p337_p5 }
 0x1d3   :  { %345 = shalt.err (!%p342_p7)
}
 0x1d4   :  { %s349_s30 = smov 128   ;;  %s350_s1 = smov 8  }
 0x1d5   :  { %236 = dma.vmem_to_hbm [thread:$0]  %s231_s22, 256, %s450_s5, [#allocation3], %s349_s30, %s349_s30, %s350_s1  }
 0x1d6   :  { %346 = dma.done.wait [#allocation3], 256  }
 0x1d7   :  { %347 = vsyncadd [#allocation3], 4294967040 }
 0x1d8   :  { %240 = vsyncpa [#allocation3], 1 }

// kernel: tpu_custom_call.1
= control target key start
LH: loop header
LB: loop body
LE: loop exit
PB: predicated region body
PF: predicated region fallthrough
CT: control target
= control target key end

     0   :  { %vm34_vm0 = vcmask 261120   ;;  %s445_s0 = inlined_call_operand.vmem [shape: f32[16,32], index: 0, kind: input, shape index: {}]   ;;  %s446_s1 = inlined_call_operand.vmem [shape: f32[32,64], index: 1, kind: input, shape index: {}]   ;;  %s447_s2 = inlined_call_operand.vmem [shape: f32[1,64], index: 2, kind: input, shape index: {}]   ;;  %s448_s3 = inlined_call_operand.vmem [shape: f32[64,32], index: 3, kind: input, shape index: {}]   ;;  %s449_s4 = inlined_call_operand.vmem [shape: f32[1,32], index: 4, kind: input, shape index: {}]   ;;  %s450_s5 = inlined_call_operand.hbm [shape: f32[16,32], index: 5, kind: output, shape index: {}]  }
   0x1   :  { %v23_v0 = vld [vmem:[%s446_s1] sm:$0xff]  ;;  %v24_v1 = vld [vmem:[%s446_s1 + $0x8] sm:$0xff]  ;;  %v25_v2 = vld [vmem:[%s446_s1 + $0x10] sm:$0xff] }
   0x2   :  { %v293_v3 = vpack.c.bf16 %v24_v1, %v23_v0  ;;  %v26_v4 = vld [vmem:[%s446_s1 + $0x18] sm:$0xff]  ;;  %v21_v5 = vld [vmem:[%s445_s0] sm:$0xff] }
   0x3   :  { %v297_v6 = vpack.c.bf16 %v26_v4, %v25_v2  ;;  %271 = vmatprep.mubr.msk.f32.mxu0 %vm34_vm0, %v21_v5 }
   0x4   :  { %10 = vsyncpa [#allocation3], 0  ;;  %294 = vmatprep.subr.bf16.mxu0 %v293_v3  ;;  %v22_v7 = vld [vmem:[%s445_s0 + $0x8] sm:$0xff]  ;;  %v126_v8 = vld [vmem:[%s448_s3] sm:$0xff]  ;;  %vm141_vm1 = vcmask 523264   ;;  %s348_s21 = smov [#allocation2]  }
   0x5   :  { %296 = vmatpush3.bf16.msra.mxu0 %v293_v3  ;;  %v127_v9 = vld [vmem:[%s448_s3 + $0x8] sm:$0xff]  ;;  %v128_v11 = vld [vmem:[%s448_s3 + $0x10] sm:$0xff]  ;;  %v129_v12 = vld [vmem:[%s448_s3 + $0x18] sm:$0xff]  ;;  %s230_s22 = sshll.u32 %s348_s21, 4  ;;  %s231_s22 = int_to_ptr.vmem [resolvable:$true] %s230_s22 }
   0x6   :  { %298 = vmatprep.subr.bf16.mxu0 %v297_v6  ;;  %v301_v10 = vpack.c.bf16 %v127_v9, %v126_v8  ;;  %v305_v13 = vpack.c.bf16 %v129_v12, %v128_v11  ;;  %v130_v14 = vld [vmem:[%s448_s3 + $0x20] sm:$0xff]  ;;  %v131_v15 = vld [vmem:[%s448_s3 + $0x28] sm:$0xff]  ;;  %v132_v17 = vld [vmem:[%s448_s3 + $0x30] sm:$0xff]  ;;  %s324_s23 = scalar_lea.vmem %s231_s22, 256  ;;  %p329_p1 = scmp.lt.s32.totalorder %s231_s22, %s231_s22 }
   0x7   :  { %v309_v16 = vpack.c.bf16 %v131_v15, %v130_v14  ;;  %v133_v18 = vld [vmem:[%s448_s3 + $0x38] sm:$0xff]  ;;  %v241_v20 = vld [vmem:[%s447_s2] ss:$0 sm:$0xff]  ;;  %p325_p0 = scmp.ne.s32.totalorder %s231_s22, %s324_s23  ;;  %p330_p2 = scmp.lt.s32.totalorder %s324_s23, %s324_s23 }
   0x8   :  { %302 = vmatprep.subr.bf16.mxu1 %v301_v10  ;;  %v313_v19 = vpack.c.bf16 %v133_v18, %v132_v17  ;;  %v244_v35 = vld [vmem:[%s449_s4] ss:$0 sm:$0xff] }
   0x9   :  { %300 = vmatpush3.bf16.msra.mxu0 %v297_v6  ;;  %304 = vmatpush3.bf16.msra.mxu1 %v301_v10  ;;  %p331_p3 = por %p330_p2, %p329_p1 }
   0xa   :  { %306 = vmatprep.subr.bf16.mxu1 %v305_v13 }
   0xb   :  { %p332_p4 = pnand %p331_p3, %p325_p0 }
   0xc   :  { %272 = vmatmul.mubr.msk.f32.vlgmr.msra.gmra.mrb[0].mxu0 %vm34_vm0, %v22_v7 }
   0xd   :  { %308 = vmatpush3.bf16.msra.mxu1 %v305_v13 }
   0xe   :  { %310 = vmatprep.subr.bf16.mxu1 %v309_v16 }
  0x11   :  { %312 = vmatpush3.bf16.msra.mxu1 %v309_v16 }
  0x12   :  { %314 = vmatprep.subr.bf16.mxu1 %v313_v19 }
  0x15   :  { %316 = vmatpush3.bf16.msra.mxu1 %v313_v19 }
  0xdf   :  { %v273_v21 = vpop.f32.mrb[0].mxu0 }
  0xe0   :  { %v113_v22 = vadd.f32 %v273_v21, %v241_v20  ;;  %v107_v23 = vpop.f32.mrb[1].mxu0 }
  0xe1   :  { %v108_v24 = vadd.f32 %v241_v20, %v107_v23 }
  0xe2   :  { %v119_v25 = vmul.f32 0.70710677, %v113_v22  ;;  %v117_v32 = vmul.f32 0.5, %v113_v22 }
  0xe3   :  { %v118_v26 = vmul.f32 0.70710677, %v108_v24  ;;  %v116_v30 = vmul.f32 0.5, %v108_v24 }
  0xe4   :  { %320 = verf.f32 %v119_v25 }
  0xe5   :  { %322 = verf.f32 %v118_v26 }
  0xee   :  { %v321_v27 = vpop.eup %320 }
  0xef   :  { %v323_v28 = vpop.eup %322  ;;  %v123_v29 = vadd.f32 1.0, %v321_v27 }
  0xf0   :  { %v122_v31 = vadd.f32 1.0, %v323_v28 }
  0xf1   :  { %v125_v34 = vmul.f32 %v123_v29, %v117_v32 }
  0xf2   :  { %v124_v33 = vmul.f32 %v122_v31, %v116_v30 }
  0xf4   :  { %290 = vmatprep.mubr.msk.f32.mxu1 %vm141_vm1, %v124_v33 }
  0xf5   :  { %291 = vmatmul.mubr.msk.f32.vlgmr.msra.gmra.mrb[0].mxu1 %vm141_vm1, %v125_v34 }
 0x1c8   :  { %v292_v36 = vpop.f32.mrb[0].mxu1 }
 0x1c9   :  { %v220_v37 = vadd.f32 %v292_v36, %v244_v35  ;;  %v214_v38 = vpop.f32.mrb[1].mxu1 }
 0x1ca   :  { %v215_v39 = vadd.f32 %v244_v35, %v214_v38 }
 0x1cb   :  { %224 = vst.msk [vmem:[#allocation2 + $0x8] sm:$0xff] %vm34_vm0, %v220_v37 }
 0x1cc   :  { %223 = vst.msk [vmem:[#allocation2] sm:$0xff] %vm34_vm0, %v215_v39 }
 0x1cd   :  { %335 = shalt.err (!%p332_p4)
}
 0x1ce   :  { %s336_s25 = scalar_lea.hbm %s450_s5, 256 }
 0x1cf   :  { %p337_p5 = scmp.ne.s32.totalorder %s450_s5, %s336_s25  ;;  %p340_p6 = scmp.lt.u32.totalorder %s336_s25, %s450_s5 }
 0x1d1   :  { %p342_p7 = pnand %p340_p6, %p337_p5 }
 0x1d3   :  { %345 = shalt.err (!%p342_p7)
}
 0x1d4   :  { %s349_s30 = smov 128   ;;  %s350_s1 = smov 8  }
 0x1d5   :  { %236 = dma.vmem_to_hbm [thread:$0]  %s231_s22, 256, %s450_s5, [#allocation3], %s349_s30, %s349_s30, %s350_s1  }
 0x1d6   :  { %346 = dma.done.wait [#allocation3], 256  }
 0x1d7   :  { %347 = vsyncadd [#allocation3], 4294967040 }
 0x1d8   :  { %240 = vsyncpa [#allocation3], 1 }

</bundles_post_ra>
